<compile_context>
chip_gen: v6e
topology: v6e:2x2x1
jax: 0.10.0
libtpu: 0.0.40
codegen_flags: <defaults>
</compile_context>

<pallas_src>
import functools

import jax
import jax.numpy as jnp
from jax.experimental import pallas as pl
from jax.experimental.pallas import tpu as pltpu

INPUTS, H1, H2, H3, OUTPUT = 37, 120, 120, 120, 12
HPAD = 128             # lane-dense hidden width
DEFAULT_TB = 512       # batch tile (multiple of 8)


def _round_up(n, m):
    return ((n + m - 1) // m) * m


def _cdiv(a, b):
    return -(-a // b)


def _mlp_kernel(x_ref, w1_ref, b1_ref, w2_ref, b2_ref, w3_ref, b3_ref,
                w4_ref, b4_ref, o_ref):
    # Four matmuls + bias + ReLU fused. Weights are bf16; MXU accumulates f32.
    x = x_ref[...].astype(jnp.bfloat16)
    h = jnp.maximum(
        jnp.dot(x, w1_ref[...], preferred_element_type=jnp.float32) + b1_ref[...], 0.0)
    h = jnp.maximum(
        jnp.dot(h.astype(jnp.bfloat16), w2_ref[...],
                preferred_element_type=jnp.float32) + b2_ref[...], 0.0)
    h = jnp.maximum(
        jnp.dot(h.astype(jnp.bfloat16), w3_ref[...],
                preferred_element_type=jnp.float32) + b3_ref[...], 0.0)
    y = jnp.dot(h.astype(jnp.bfloat16), w4_ref[...],
                preferred_element_type=jnp.float32) + b4_ref[...]
    o_ref[...] = y.astype(o_ref.dtype)     # compact (TB, 12) writeback


def _choose_tile(B, tb):
    """Pick (TB, B_pad) with TB % 8 == 0 and TB | B_pad.

    Guarantees >=2 grid steps once the batch is big enough (v7x megacore),
    and >=B_pad//tb steps for large batches (keeps the x/out DMA pipeline full).
    """
    B_pad8 = _round_up(max(B, 1), 8)
    if B_pad8 <= 16:                       # tiny batch: one step, no split
        return B_pad8, B_pad8
    if B_pad8 <= 2 * tb:                   # medium: exactly two steps
        TB = _round_up(_cdiv(B_pad8, 2), 8)
        return TB, 2 * TB
    TB = tb                                # large: many steps of size tb
    return TB, _round_up(B_pad8, TB)


@functools.partial(jax.jit, static_argnames=("tb",))
def mlp_forward(x, params, tb=DEFAULT_TB):
    """x: (B, INPUTS) float32. params: dict with bf16 weights, f32 biases."""
    B = x.shape[0]
    TB, B_pad = _choose_tile(B, tb)
    if B_pad != B:
        x = jnp.pad(x, ((0, B_pad - B), (0, 0)))

    # Pad hidden width 120 -> 128 (zero weights/bias => zeros flow through ReLU
    # and contribute nothing downstream). Output layer keeps N = 12 so the
    # writeback is compact.
    w1 = jnp.pad(params["w1"], ((0, 0), (0, HPAD - H1)))
    b1 = jnp.pad(params["b1"], ((0, 0), (0, HPAD - H1)))
    w2 = jnp.pad(params["w2"], ((0, HPAD - H1), (0, HPAD - H2)))
    b2 = jnp.pad(params["b2"], ((0, 0), (0, HPAD - H2)))
    w3 = jnp.pad(params["w3"], ((0, HPAD - H2), (0, HPAD - H3)))
    b3 = jnp.pad(params["b3"], ((0, 0), (0, HPAD - H3)))
    w4 = jnp.pad(params["w4"], ((0, HPAD - H3), (0, 0)))
    b4 = params["b4"]

    resident = lambda a: pl.BlockSpec(a.shape, lambda i: (0,) * a.ndim)

    out = pl.pallas_call(
        _mlp_kernel,
        out_shape=jax.ShapeDtypeStruct((B_pad, OUTPUT), jnp.float32),
        grid=(B_pad // TB,),
        in_specs=[
            pl.BlockSpec((TB, INPUTS), lambda i: (i, 0)),   # x tile moves
            resident(w1), resident(b1),
            resident(w2), resident(b2),
            resident(w3), resident(b3),
            resident(w4), resident(b4),
        ],
        out_specs=pl.BlockSpec((TB, OUTPUT), lambda i: (i, 0)),  # compact out
        compiler_params=pltpu.CompilerParams(
            dimension_semantics=("parallel",)),   # shard batch steps on v7x
    )(x, w1, b1, w2, b2, w3, b3, w4, b4)

    return out if B_pad == B else out[:B]


def init_params(key):
    """Deterministic init matching the PyTorch module's shapes.

    Weights stored (in_features, out_features) so y = x @ W + b, and in bf16
    for the MXU; biases stay f32.
    """
    ks = jax.random.split(key, 8)

    def linear(kw, kb, fan_in, fan_out):
        # PyTorch nn.Linear default: U(-1/sqrt(fan_in), 1/sqrt(fan_in))
        bound = 1.0 / jnp.sqrt(jnp.float32(fan_in))
        w = jax.random.uniform(kw, (fan_in, fan_out), jnp.float32, -bound, bound)
        b = jax.random.uniform(kb, (1, fan_out), jnp.float32, -bound, bound)
        return w.astype(jnp.bfloat16), b

    w1, b1 = linear(ks[0], ks[1], INPUTS, H1)
    w2, b2 = linear(ks[2], ks[3], H1, H2)
    w3, b3 = linear(ks[4], ks[5], H2, H3)
    w4, b4 = linear(ks[6], ks[7], H3, OUTPUT)
    return dict(w1=w1, b1=b1, w2=w2, b2=b2, w3=w3, b3=b3, w4=w4, b4=b4)


def mlp_reference(x, p):
    """Precision-matched reference: bf16 weights/activations, f32 accumulate."""
    rd = lambda a: a.astype(jnp.bfloat16).astype(jnp.float32)
    hi = jax.lax.Precision.HIGHEST
    h = rd(x)
    h = jnp.maximum(jnp.dot(h, rd(p["w1"]), precision=hi) + p["b1"], 0.0)
    h = rd(h)
    h = jnp.maximum(jnp.dot(h, rd(p["w2"]), precision=hi) + p["b2"], 0.0)
    h = rd(h)
    h = jnp.maximum(jnp.dot(h, rd(p["w3"]), precision=hi) + p["b3"], 0.0)
    h = rd(h)
    return jnp.dot(h, rd(p["w4"]), precision=hi) + p["b4"]


if __name__ == "__main__":
    key = jax.random.PRNGKey(0)
    k_params, k_x = jax.random.split(key)
    params = init_params(k_params)

    batch = 8
    x = jax.random.normal(k_x, (batch, INPUTS), jnp.float32)

    out = mlp_forward(x, params)
    out = jax.block_until_ready(out)

    ref = mlp_reference(x, params)
    assert out.shape == (batch, OUTPUT)
    assert jnp.allclose(out, ref, atol=1e-3, rtol=1e-3), (
        float(jnp.max(jnp.abs(out - ref))))
    print("KERNEL_OK")
</pallas_src>

<mosaic_0001>
module attributes {stable_mosaic.version = 11 : i64} {
  func.func @_mlp_kernel(%arg0: i32, %arg1: memref<8x37xf32, #tpu.memory_space<vmem>>, %arg2: memref<37x128xbf16, #tpu.memory_space<vmem>>, %arg3: memref<1x128xf32, #tpu.memory_space<vmem>>, %arg4: memref<128x128xbf16, #tpu.memory_space<vmem>>, %arg5: memref<1x128xf32, #tpu.memory_space<vmem>>, %arg6: memref<128x128xbf16, #tpu.memory_space<vmem>>, %arg7: memref<1x128xf32, #tpu.memory_space<vmem>>, %arg8: memref<128x12xbf16, #tpu.memory_space<vmem>>, %arg9: memref<1x12xf32, #tpu.memory_space<vmem>>, %arg10: memref<8x12xf32, #tpu.memory_space<vmem>>) attributes {dimension_semantics = [#tpu.dimension_semantics<parallel>], iteration_bounds = array<i64: 1>, scalar_prefetch = 0 : i64, scratch_operands = 0 : i64, tpu.core_type = #tpu.core_type<tc>, window_params = [{transform_indices = @transform_0, window_bounds = array<i64: 8, 37>}, {pipeline_mode = #tpu.pipeline_mode<synchronous>, transform_indices = @transform_1, window_bounds = array<i64: 37, 128>}, {pipeline_mode = #tpu.pipeline_mode<synchronous>, transform_indices = @transform_2, window_bounds = array<i64: 1, 128>}, {pipeline_mode = #tpu.pipeline_mode<synchronous>, transform_indices = @transform_3, window_bounds = array<i64: 128, 128>}, {pipeline_mode = #tpu.pipeline_mode<synchronous>, transform_indices = @transform_4, window_bounds = array<i64: 1, 128>}, {pipeline_mode = #tpu.pipeline_mode<synchronous>, transform_indices = @transform_5, window_bounds = array<i64: 128, 128>}, {pipeline_mode = #tpu.pipeline_mode<synchronous>, transform_indices = @transform_6, window_bounds = array<i64: 1, 128>}, {pipeline_mode = #tpu.pipeline_mode<synchronous>, transform_indices = @transform_7, window_bounds = array<i64: 128, 12>}, {pipeline_mode = #tpu.pipeline_mode<synchronous>, transform_indices = @transform_8, window_bounds = array<i64: 1, 12>}, {transform_indices = @transform_9, window_bounds = array<i64: 8, 12>}]} {
    %c0 = arith.constant 0 : index
    %c0_0 = arith.constant 0 : index
    %0 = vector.load %arg1[%c0, %c0_0] : memref<8x37xf32, #tpu.memory_space<vmem>>, vector<8x37xf32>
    %1 = arith.truncf %0 : vector<8x37xf32> to vector<8x37xbf16>
    %c0_1 = arith.constant 0 : index
    %c0_2 = arith.constant 0 : index
    %2 = vector.load %arg2[%c0_1, %c0_2] : memref<37x128xbf16, #tpu.memory_space<vmem>>, vector<37x128xbf16>
    %cst = arith.constant dense<0.000000e+00> : vector<8x128xf32>
    %3 = tpu.matmul %1, %2, %cst {dimension_numbers = #tpu.dot_dimension_numbers<[1], [0], [0], [1], [0, 0, 1, 1], [], []>} : vector<8x37xbf16>, vector<37x128xbf16>, vector<8x128xf32> -> vector<8x128xf32>
    %c0_3 = arith.constant 0 : index
    %c0_4 = arith.constant 0 : index
    %4 = vector.load %arg3[%c0_3, %c0_4] : memref<1x128xf32, #tpu.memory_space<vmem>>, vector<1x128xf32>
    %5 = vector.broadcast %4 : vector<1x128xf32> to vector<8x128xf32>
    %6 = arith.addf %3, %5 : vector<8x128xf32>
    %cst_5 = arith.constant 0.000000e+00 : f32
    %7 = vector.broadcast %cst_5 : f32 to vector<8x128xf32>
    %8 = arith.maximumf %6, %7 : vector<8x128xf32>
    %9 = arith.truncf %8 : vector<8x128xf32> to vector<8x128xbf16>
    %c0_6 = arith.constant 0 : index
    %c0_7 = arith.constant 0 : index
    %10 = vector.load %arg4[%c0_6, %c0_7] : memref<128x128xbf16, #tpu.memory_space<vmem>>, vector<128x128xbf16>
    %cst_8 = arith.constant dense<0.000000e+00> : vector<8x128xf32>
    %11 = tpu.matmul %9, %10, %cst_8 {dimension_numbers = #tpu.dot_dimension_numbers<[1], [0], [0], [1], [0, 0, 1, 1], [], []>} : vector<8x128xbf16>, vector<128x128xbf16>, vector<8x128xf32> -> vector<8x128xf32>
    %c0_9 = arith.constant 0 : index
    %c0_10 = arith.constant 0 : index
    %12 = vector.load %arg5[%c0_9, %c0_10] : memref<1x128xf32, #tpu.memory_space<vmem>>, vector<1x128xf32>
    %13 = vector.broadcast %12 : vector<1x128xf32> to vector<8x128xf32>
    %14 = arith.addf %11, %13 : vector<8x128xf32>
    %cst_11 = arith.constant 0.000000e+00 : f32
    %15 = vector.broadcast %cst_11 : f32 to vector<8x128xf32>
    %16 = arith.maximumf %14, %15 : vector<8x128xf32>
    %17 = arith.truncf %16 : vector<8x128xf32> to vector<8x128xbf16>
    %c0_12 = arith.constant 0 : index
    %c0_13 = arith.constant 0 : index
    %18 = vector.load %arg6[%c0_12, %c0_13] : memref<128x128xbf16, #tpu.memory_space<vmem>>, vector<128x128xbf16>
    %cst_14 = arith.constant dense<0.000000e+00> : vector<8x128xf32>
    %19 = tpu.matmul %17, %18, %cst_14 {dimension_numbers = #tpu.dot_dimension_numbers<[1], [0], [0], [1], [0, 0, 1, 1], [], []>} : vector<8x128xbf16>, vector<128x128xbf16>, vector<8x128xf32> -> vector<8x128xf32>
    %c0_15 = arith.constant 0 : index
    %c0_16 = arith.constant 0 : index
    %20 = vector.load %arg7[%c0_15, %c0_16] : memref<1x128xf32, #tpu.memory_space<vmem>>, vector<1x128xf32>
    %21 = vector.broadcast %20 : vector<1x128xf32> to vector<8x128xf32>
    %22 = arith.addf %19, %21 : vector<8x128xf32>
    %cst_17 = arith.constant 0.000000e+00 : f32
    %23 = vector.broadcast %cst_17 : f32 to vector<8x128xf32>
    %24 = arith.maximumf %22, %23 : vector<8x128xf32>
    %25 = arith.truncf %24 : vector<8x128xf32> to vector<8x128xbf16>
    %c0_18 = arith.constant 0 : index
    %c0_19 = arith.constant 0 : index
    %26 = vector.load %arg8[%c0_18, %c0_19] : memref<128x12xbf16, #tpu.memory_space<vmem>>, vector<128x12xbf16>
    %cst_20 = arith.constant dense<0.000000e+00> : vector<8x12xf32>
    %27 = tpu.matmul %25, %26, %cst_20 {dimension_numbers = #tpu.dot_dimension_numbers<[1], [0], [0], [1], [0, 0, 1, 1], [], []>} : vector<8x128xbf16>, vector<128x12xbf16>, vector<8x12xf32> -> vector<8x12xf32>
    %c0_21 = arith.constant 0 : index
    %c0_22 = arith.constant 0 : index
    %28 = vector.load %arg9[%c0_21, %c0_22] : memref<1x12xf32, #tpu.memory_space<vmem>>, vector<1x12xf32>
    %29 = vector.broadcast %28 : vector<1x12xf32> to vector<8x12xf32>
    %30 = arith.addf %27, %29 : vector<8x12xf32>
    %c0_23 = arith.constant 0 : index
    %c0_24 = arith.constant 0 : index
    %31 = vector.load %arg10[%c0_23, %c0_24] : memref<8x12xf32, #tpu.memory_space<vmem>>, vector<8x12xf32>
    tpu.vector_store %arg10[%c0_23, %c0_24], %30 {strides = array<i32>} : memref<8x12xf32, #tpu.memory_space<vmem>>, vector<8x12xf32>,
    return
  }
  func.func @transform_0(%arg0: i32) -> (i32, i32) {
    %c0_i32 = arith.constant 0 : i32
    %c0_i32_0 = arith.constant 0 : i32
    return %arg0, %c0_i32 : i32, i32
  }
  func.func @transform_1(%arg0: i32) -> (i32, i32) {
    %c0_i32 = arith.constant 0 : i32
    %c0_i32_0 = arith.constant 0 : i32
    %c0_i32_1 = arith.constant 0 : i32
    return %c0_i32, %c0_i32_0 : i32, i32
  }
  func.func @transform_2(%arg0: i32) -> (i32, i32) {
    %c0_i32 = arith.constant 0 : i32
    %c0_i32_0 = arith.constant 0 : i32
    %c0_i32_1 = arith.constant 0 : i32
    return %c0_i32, %c0_i32_0 : i32, i32
  }
  func.func @transform_3(%arg0: i32) -> (i32, i32) {
    %c0_i32 = arith.constant 0 : i32
    %c0_i32_0 = arith.constant 0 : i32
    %c0_i32_1 = arith.constant 0 : i32
    return %c0_i32, %c0_i32_0 : i32, i32
  }
  func.func @transform_4(%arg0: i32) -> (i32, i32) {
    %c0_i32 = arith.constant 0 : i32
    %c0_i32_0 = arith.constant 0 : i32
    %c0_i32_1 = arith.constant 0 : i32
    return %c0_i32, %c0_i32_0 : i32, i32
  }
  func.func @transform_5(%arg0: i32) -> (i32, i32) {
    %c0_i32 = arith.constant 0 : i32
    %c0_i32_0 = arith.constant 0 : i32
    %c0_i32_1 = arith.constant 0 : i32
    return %c0_i32, %c0_i32_0 : i32, i32
  }
  func.func @transform_6(%arg0: i32) -> (i32, i32) {
    %c0_i32 = arith.constant 0 : i32
    %c0_i32_0 = arith.constant 0 : i32
    %c0_i32_1 = arith.constant 0 : i32
    return %c0_i32, %c0_i32_0 : i32, i32
  }
  func.func @transform_7(%arg0: i32) -> (i32, i32) {
    %c0_i32 = arith.constant 0 : i32
    %c0_i32_0 = arith.constant 0 : i32
    %c0_i32_1 = arith.constant 0 : i32
    return %c0_i32, %c0_i32_0 : i32, i32
  }
  func.func @transform_8(%arg0: i32) -> (i32, i32) {
    %c0_i32 = arith.constant 0 : i32
    %c0_i32_0 = arith.constant 0 : i32
    %c0_i32_1 = arith.constant 0 : i32
    return %c0_i32, %c0_i32_0 : i32, i32
  }
  func.func @transform_9(%arg0: i32) -> (i32, i32) {
    %c0_i32 = arith.constant 0 : i32
    %c0_i32_0 = arith.constant 0 : i32
    return %arg0, %c0_i32 : i32, i32
  }
}

</mosaic_0001>

<bundles_post_ra>
// kernel: mlp_forward.1
= control target key start
LH: loop header
LB: loop body
LE: loop exit
PB: predicated region body
PF: predicated region fallthrough
CT: control target
= control target key end

     0   :  { %v655_v1 = vmov 0.0   ;;  %vm67_vm0 = vcmask 1041408   ;;  %vm68_vm1 = vcmask 1042432   ;;  %v656_v2 = vmov 65535   ;;  %s843_s0 = inlined_call_operand.vmem [shape: f32[8,37], index: 0, kind: input, shape index: {}]   ;;  %s844_s1 = inlined_call_operand.vmem [shape: bf16[37,128], index: 1, kind: input, shape index: {}]   ;;  %s845_s2 = inlined_call_operand.vmem [shape: f32[1,128], index: 2, kind: input, shape index: {}]   ;;  %s846_s3 = inlined_call_operand.vmem [shape: bf16[128,128], index: 3, kind: input, shape index: {}]   ;;  %s847_s4 = inlined_call_operand.vmem [shape: f32[1,128], index: 4, kind: input, shape index: {}]   ;;  %s848_s5 = inlined_call_operand.vmem [shape: bf16[128,128], index: 5, kind: input, shape index: {}]   ;;  %s849_s6 = inlined_call_operand.vmem [shape: f32[1,128], index: 6, kind: input, shape index: {}]   ;;  %s850_s7 = inlined_call_operand.vmem [shape: bf16[128,12], index: 7, kind: input, shape index: {}]   ;;  %s851_s8 = inlined_call_operand.vmem [shape: f32[1,12], index: 8, kind: input, shape index: {}]   ;;  %s852_s9 = inlined_call_operand.hbm [shape: f32[8,12], index: 9, kind: output, shape index: {}]  }
   0x1   :  { %v606_v0 = vld [vmem:[%s844_s1 + $0x10] ss:$0 sps:$4 sm:$0x77]   ;;  %532 = vmatprep.subr.bf16.mxu0 %v655_v1  ;;  %542 = vmatprep.subr.bf16.mxu1 %v655_v1  ;;  %v69_v3 = vsel %vm67_vm0, 4294967295, %v656_v2  ;;  %vm657_vm2 = vmmov 0   ;;  %v609_v6 = vld [vmem:[%s846_s3 + $0x38] sm:$0xff]  }
   0x2   :  { %v70_v4 = vsel %vm68_vm1, %v69_v3, 0  ;;  %538 = vmatprep.mubr.msk.bf16.mxu0 %vm657_vm2, %v655_v1  ;;  %558 = vmatprep.mubr.msk.bf16.mxu1 %vm657_vm2, %v655_v1  ;;  %v607_v7 = vld [vmem:[%s844_s1 + $0x8] sm:$0xff]   ;;  %v610_v8 = vld [vmem:[%s846_s3 + $0x30] sm:$0xff]   ;;  %v608_v9 = vld [vmem:[%s844_s1] sm:$0xff]   ;;  %vm63_vm3 = vcmask 302080  }
   0x3   :  { %v72_v5 = vand.u32 %v606_v0, %v70_v4  ;;  %543 = vmatpush3.bf16.msra.mxu1 %v609_v6  ;;  %v34_v10 = vld [vmem:[%s843_s0] sm:$0xff]  ;;  %v611_v11 = vld [vmem:[%s846_s3 + $0x28] sm:$0xff]   ;;  %v613_v14 = vld [vmem:[%s846_s3 + $0x18] sm:$0xff]  }
   0x4   :  { %544 = vmatprep.subr.bf16.mxu1 %v655_v1  ;;  %v612_v12 = vld [vmem:[%s846_s3 + $0x20] sm:$0xff]   ;;  %v35_v13 = vpack.c.bf16 %v34_v10, %v34_v10  ;;  %v614_v15 = vld [vmem:[%s846_s3 + $0x10] sm:$0xff]  }
   0x5   :  { %533 = vmatpush3.bf16.msra.mxu0 %v72_v5 }
   0x6   :  { %534 = vmatprep.subr.bf16.mxu0 %v655_v1 }
   0x7   :  { %545 = vmatpush3.bf16.msra.mxu1 %v610_v8 }
   0x8   :  { %546 = vmatprep.subr.bf16.mxu1 %v655_v1 }
   0x9   :  { %535 = vmatpush3.bf16.msra.mxu0 %v607_v7 }
   0xa   :  { %536 = vmatprep.subr.bf16.mxu0 %v655_v1 }
   0xb   :  { %547 = vmatpush3.bf16.msra.mxu1 %v611_v11 }
   0xc   :  { %548 = vmatprep.subr.bf16.mxu1 %v655_v1 }
   0xd   :  { %537 = vmatpush3.bf16.msra.mxu0 %v608_v9 }
   0xe   :  { %562 = vmatprep.subr.bf16.mxu0 %v655_v1 }
   0xf   :  { %549 = vmatpush3.bf16.msra.mxu1 %v612_v12 }
  0x10   :  { %539 = vmatmul.mubr.msk.bf16.vlgmr.msra.gmra.mxu0 %vm63_vm3, %v35_v13  ;;  %550 = vmatprep.subr.bf16.mxu1 %v655_v1 }
  0x11   :  { %578 = vmatprep.mubr.msk.bf16.mxu0 %vm657_vm2, %v655_v1 }
  0x13   :  { %551 = vmatpush3.bf16.msra.mxu1 %v613_v14 }
  0x14   :  { %14 = vsyncpa [#allocation3], 0  ;;  %552 = vmatprep.subr.bf16.mxu1 %v655_v1  ;;  %v615_v16 = vld [vmem:[%s846_s3 + $0x8] sm:$0xff]   ;;  %v616_v17 = vld [vmem:[%s846_s3] sm:$0xff]   ;;  %s658_s22 = smov [#allocation2]   ;;  %vm453_vm4 = vcmask 97280  }
  0x15   :  { %v617_v18 = vld [vmem:[%s848_s5 + $0x38] sm:$0xff]   ;;  %v618_v19 = vld [vmem:[%s848_s5 + $0x30] sm:$0xff]   ;;  %v619_v20 = vld [vmem:[%s848_s5 + $0x28] sm:$0xff]   ;;  %s461_s23 = sshll.u32 %s658_s22, 4  ;;  %s462_s23 = int_to_ptr.vmem [resolvable:$true] %s461_s23 }
  0x16   :  { %563 = vmatpush3.bf16.msra.mxu0 %v617_v18  ;;  %v620_v21 = vld [vmem:[%s848_s5 + $0x20] sm:$0xff]   ;;  %v621_v22 = vld [vmem:[%s848_s5 + $0x18] sm:$0xff]   ;;  %v622_v23 = vld [vmem:[%s848_s5 + $0x10] sm:$0xff]   ;;  %p638_p1 = scmp.lt.s32.totalorder %s462_s23, %s462_s23 }
  0x17   :  { %553 = vmatpush3.bf16.msra.mxu1 %v614_v15  ;;  %564 = vmatprep.subr.bf16.mxu0 %v655_v1  ;;  %v469_v24 = vld [vmem:[%s845_s2] ss:$0 sm:$0xff]  ;;  %v623_v32 = vld [vmem:[%s848_s5 + $0x8] sm:$0xff]   ;;  %v625_v34 = vld [vmem:[%s850_s7 + $0x38] sm:$0xff]  }
  0x18   :  { %554 = vmatprep.subr.bf16.mxu1 %v655_v1  ;;  %v624_v33 = vld [vmem:[%s848_s5] sm:$0xff]   ;;  %v626_v35 = vld [vmem:[%s850_s7 + $0x30] sm:$0xff]   ;;  %v627_v36 = vld [vmem:[%s850_s7 + $0x28] sm:$0xff]  }
  0x19   :  { %v628_v37 = vld [vmem:[%s850_s7 + $0x20] sm:$0xff]   ;;  %v629_v38 = vld [vmem:[%s850_s7 + $0x18] sm:$0xff]   ;;  %v630_v39 = vld [vmem:[%s850_s7 + $0x10] sm:$0xff]  }
  0x1a   :  { %565 = vmatpush3.bf16.msra.mxu0 %v618_v19  ;;  %v474_v40 = vld [vmem:[%s847_s4] ss:$0 sm:$0xff]  ;;  %v631_v48 = vld [vmem:[%s850_s7 + $0x8] sm:$0xff]  }
  0x1b   :  { %555 = vmatpush3.bf16.msra.mxu1 %v615_v16  ;;  %566 = vmatprep.subr.bf16.mxu0 %v655_v1  ;;  %v632_v49 = vld [vmem:[%s850_s7] sm:$0xff]  }
  0x1c   :  { %556 = vmatprep.subr.bf16.mxu1 %v655_v1  ;;  %v483_v50 = vld [vmem:[%s849_s6] ss:$0 sm:$0xff]  ;;  %s633_s6 = scalar_lea.vmem %s462_s23, 128 }
  0x1d   :  { %v492_v58 = vld [vmem:[%s851_s8] ss:$0 sm:$0xff]  ;;  %p634_p0 = scmp.ne.s32.totalorder %s462_s23, %s633_s6  ;;  %p639_p2 = scmp.lt.s32.totalorder %s633_s6, %s633_s6 }
  0x1e   :  { %567 = vmatpush3.bf16.msra.mxu0 %v619_v20 }
  0x1f   :  { %557 = vmatpush3.bf16.msra.mxu1 %v616_v17  ;;  %568 = vmatprep.subr.bf16.mxu0 %v655_v1  ;;  %p640_p3 = por %p639_p2, %p638_p1 }
  0x20   :  { %582 = vmatprep.subr.bf16.mxu1 %v655_v1 }
  0x21   :  { %p641_p4 = pnand %p640_p3, %p634_p0 }
  0x22   :  { %569 = vmatpush3.bf16.msra.mxu0 %v620_v21 }
  0x23   :  { %570 = vmatprep.subr.bf16.mxu0 %v655_v1 }
  0x26   :  { %571 = vmatpush3.bf16.msra.mxu0 %v621_v22 }
  0x27   :  { %572 = vmatprep.subr.bf16.mxu0 %v655_v1 }
  0x2a   :  { %573 = vmatpush3.bf16.msra.mxu0 %v622_v23 }
  0x2b   :  { %574 = vmatprep.subr.bf16.mxu0 %v655_v1 }
  0x2e   :  { %575 = vmatpush3.bf16.msra.mxu0 %v623_v32 }
  0x2f   :  { %576 = vmatprep.subr.bf16.mxu0 %v655_v1 }
  0x32   :  { %577 = vmatpush3.bf16.msra.mxu0 %v624_v33 }
  0xd0   :  { %v108_v25 = vpop.f32.mrf.mxu0 }
  0xd1   :  { %v109_v26 = vadd.f32 %v469_v24, %v108_v25 }
  0xd2   :  { %v540_v27 = vpop.f32.mrf.mxu0 }
  0xd3   :  { %v114_v28 = vmax.f32 %v109_v26, 0.0 }
  0xd4   :  { %v111_v29 = vpop.f32.mrf.mxu0 }
  0xd5   :  { %v115_v30 = vpack.c.bf16 %v114_v28, %v114_v28 }
  0xd6   :  { %v541_v31 = vpop.f32.mrf.mxu0 }
  0xd7   :  { %559 = vmatmul.mubr.bf16.vlgmr.msra.gmra.mxu1 %v115_v30 }
  0xd8   :  { %598 = vmatprep.mubr.msk.bf16.mxu1 %vm657_vm2, %v655_v1  ;;  %583 = vmatpush3.bf16.msra.mxu1 %v625_v34 }
  0xd9   :  { %584 = vmatprep.subr.bf16.mxu1 %v655_v1 }
  0xdc   :  { %585 = vmatpush3.bf16.msra.mxu1 %v626_v35 }
  0xdd   :  { %586 = vmatprep.subr.bf16.mxu1 %v655_v1 }
  0xe0   :  { %587 = vmatpush3.bf16.msra.mxu1 %v627_v36 }
  0xe1   :  { %588 = vmatprep.subr.bf16.mxu1 %v655_v1 }
  0xe4   :  { %589 = vmatpush3.bf16.msra.mxu1 %v628_v37 }
  0xe5   :  { %590 = vmatprep.subr.bf16.mxu1 %v655_v1 }
  0xe8   :  { %591 = vmatpush3.bf16.msra.mxu1 %v629_v38 }
  0xe9   :  { %592 = vmatprep.subr.bf16.mxu1 %v655_v1 }
  0xec   :  { %593 = vmatpush3.bf16.msra.mxu1 %v630_v39 }
  0xed   :  { %594 = vmatprep.subr.bf16.mxu1 %v655_v1 }
  0xf0   :  { %595 = vmatpush3.bf16.msra.mxu1 %v631_v48 }
  0xf1   :  { %596 = vmatprep.subr.bf16.mxu1 %v655_v1 }
  0xf4   :  { %597 = vmatpush3.bf16.msra.mxu1 %v632_v49 }
 0x197   :  { %v221_v41 = vpop.f32.mrf.mxu1 }
 0x198   :  { %v222_v42 = vadd.f32 %v474_v40, %v221_v41 }
 0x199   :  { %v560_v43 = vpop.f32.mrf.mxu1 }
 0x19a   :  { %v227_v44 = vmax.f32 %v222_v42, 0.0 }
 0x19b   :  { %v224_v45 = vpop.f32.mrf.mxu1 }
 0x19c   :  { %v228_v46 = vpack.c.bf16 %v227_v44, %v227_v44 }
 0x19d   :  { %v561_v47 = vpop.f32.mrf.mxu1 }
 0x19e   :  { %579 = vmatmul.mubr.bf16.vlgmr.msra.gmra.mxu0 %v228_v46 }
 0x25e   :  { %v334_v51 = vpop.f32.mrf.mxu0 }
 0x25f   :  { %v335_v52 = vadd.f32 %v483_v50, %v334_v51 }
 0x260   :  { %v580_v53 = vpop.f32.mrf.mxu0 }
 0x261   :  { %v340_v54 = vmax.f32 %v335_v52, 0.0 }
 0x262   :  { %v337_v55 = vpop.f32.mrf.mxu0 }
 0x263   :  { %v341_v56 = vpack.c.bf16 %v340_v54, %v340_v54 }
 0x264   :  { %v581_v57 = vpop.f32.mrf.mxu0 }
 0x265   :  { %599 = vmatmul.mubr.bf16.vlgmr.msra.gmra.mxu1 %v341_v56 }
 0x325   :  { %v447_v59 = vpop.f32.mrf.mxu1 }
 0x326   :  { %v448_v60 = vadd.f32 %v492_v58, %v447_v59 }
 0x327   :  { %v600_v61 = vpop.f32.mrf.mxu1 }
 0x328   :  { %454 = vst.msk [vmem:[#allocation2] sm:$0xff] %vm453_vm4, %v448_v60 }
 0x329   :  { %v450_v62 = vpop.f32.mrf.mxu1 }
 0x32a   :  { %644 = shalt.err (!%p641_p4)
}
 0x32b   :  { %464 = dma.vmem_to_hbm [thread:$0]  %s462_s23, 128, %s852_s9, [#allocation3]   ;;  %v601_v63 = vpop.f32.mrf.mxu1 }
 0x32c   :  { %653 = dma.done.wait [#allocation3], 128  }
 0x32d   :  { %654 = vsyncadd [#allocation3], 4294967168 }
 0x32e   :  { %468 = vsyncpa [#allocation3], 1 }

</bundles_post_ra>
